<compile_context>
chip_gen: v6e
topology: v6e:2x2x1
jax: 0.10.0
libtpu: 0.0.40
codegen_flags: <defaults>
</compile_context>

<pallas_src>
import functools

import jax
import jax.numpy as jnp
from jax.experimental import pallas as pl
from jax.experimental.pallas import tpu as pltpu

# Padded layout constants.
H_PI_PAD = 256   # 200 -> 256
H_V_PAD = 128    # 100 -> 128
H_FUSED = H_PI_PAD + H_V_PAD   # 384 = 3 * 128, lane-aligned on every TPU gen
OUT_PAD = 128    # logits (a_dim) + value (1) padded to one 128-lane slab


def _round_up(x, m):
    return (x + m - 1) // m * m


def _net_fused_kernel(x_ref, w1_ref, b1_ref, w2_ref, b2_ref, out_ref):
    """Two fused matmuls: x -> relu6 hidden (B,384) -> combined heads (B,128)."""
    x = x_ref[...]

    # Fused first layer (pi1 || v1), bias + relu6 in one VPU pass.
    h = jnp.dot(x, w1_ref[...], preferred_element_type=jnp.float32)
    h = jnp.clip(h + b1_ref[...], 0.0, 6.0)

    # Fused block-diagonal second layer: columns [0:a_dim] = logits,
    # column [a_dim] = value, rest = zero padding.
    out = jnp.dot(h, w2_ref[...], preferred_element_type=jnp.float32)
    out_ref[...] = out + b2_ref[...]


def pack_params(params, s_dim, a_dim):
    """One-time packing of unfused (in,out)-layout params into fused, padded,
    lane-aligned weights."""
    f32 = jnp.float32

    w1 = jnp.zeros((s_dim, H_FUSED), f32)
    w1 = w1.at[:, :200].set(params["w_pi1"].astype(f32))
    w1 = w1.at[:, H_PI_PAD:H_PI_PAD + 100].set(params["w_v1"].astype(f32))

    b1 = jnp.zeros((1, H_FUSED), f32)
    b1 = b1.at[:, :200].set(params["b_pi1"].reshape(1, 200).astype(f32))
    b1 = b1.at[:, H_PI_PAD:H_PI_PAD + 100].set(
        params["b_v1"].reshape(1, 100).astype(f32))

    w2 = jnp.zeros((H_FUSED, OUT_PAD), f32)
    w2 = w2.at[:200, :a_dim].set(params["w_pi2"].astype(f32))
    w2 = w2.at[H_PI_PAD:H_PI_PAD + 100, a_dim].set(
        params["w_v2"].reshape(100).astype(f32))

    b2 = jnp.zeros((1, OUT_PAD), f32)
    b2 = b2.at[:, :a_dim].set(params["b_pi2"].reshape(1, a_dim).astype(f32))
    b2 = b2.at[:, a_dim].set(params["b_v2"].reshape(()).astype(f32))

    return {"w1": w1, "b1": b1, "w2": w2, "b2": b2, "a_dim": a_dim}


@functools.partial(jax.jit, static_argnames=("a_dim",))
def _net_forward_padded(x, w1, b1, w2, b2, *, a_dim):
    B, s_dim = x.shape

    # Batch tiling: single step for small batches; 128-row (512 for very large
    # batches) parallel blocks otherwise, so v7x's two TensorCores split rows
    # while per-step overhead stays amortized.
    if B >= 1024:
        block_b = 512
    elif B >= 128:
        block_b = 128
    else:
        block_b = _round_up(B, 8)
    b_pad = _round_up(B, block_b)
    if b_pad != B:
        x = jnp.pad(x, ((0, b_pad - B), (0, 0)))
    grid = (b_pad // block_b,)

    out = pl.pallas_call(
        _net_fused_kernel,
        out_shape=jax.ShapeDtypeStruct((b_pad, OUT_PAD), jnp.float32),
        grid_spec=pltpu.PrefetchScalarGridSpec(
            num_scalar_prefetch=0,
            grid=grid,
            in_specs=[
                pl.BlockSpec((block_b, s_dim), lambda i: (i, 0)),
                pl.BlockSpec((s_dim, H_FUSED), lambda i: (0, 0)),
                pl.BlockSpec((1, H_FUSED), lambda i: (0, 0)),
                pl.BlockSpec((H_FUSED, OUT_PAD), lambda i: (0, 0)),
                pl.BlockSpec((1, OUT_PAD), lambda i: (0, 0)),
            ],
            out_specs=pl.BlockSpec((block_b, OUT_PAD), lambda i: (i, 0)),
        ),
        compiler_params=pltpu.CompilerParams(
            dimension_semantics=("parallel",)),
    )(x, w1, b1, w2, b2)

    logits = out[:B, :a_dim]
    values = out[:B, a_dim:a_dim + 1]
    return logits, values


def net_forward(x, packed):
    """A3C Net forward as a single fused Pallas TPU kernel.

    x: (B, s_dim) float32.  packed: result of pack_params().
    Returns (logits (B, a_dim), values (B, 1)).
    """
    return _net_forward_padded(
        x, packed["w1"], packed["b1"], packed["w2"], packed["b2"],
        a_dim=packed["a_dim"])


def init_params(key, s_dim, a_dim):
    """Deterministic init mirroring set_init: weights ~ N(0, 0.1), biases = 0."""
    k1, k2, k3, k4 = jax.random.split(key, 4)
    std = 0.1
    return {
        "w_pi1": (std * jax.random.normal(k1, (s_dim, 200))).astype(jnp.float32),
        "b_pi1": jnp.zeros((1, 200), jnp.float32),
        "w_pi2": (std * jax.random.normal(k2, (200, a_dim))).astype(jnp.float32),
        "b_pi2": jnp.zeros((1, a_dim), jnp.float32),
        "w_v1": (std * jax.random.normal(k3, (s_dim, 100))).astype(jnp.float32),
        "b_v1": jnp.zeros((1, 100), jnp.float32),
        "w_v2": (std * jax.random.normal(k4, (100, 1))).astype(jnp.float32),
        "b_v2": jnp.zeros((1, 1), jnp.float32),
    }


def net_forward_ref(x, params):
    """Pure-JAX reference (unfused) for correctness checking."""
    pi1 = jnp.clip(x @ params["w_pi1"] + params["b_pi1"], 0.0, 6.0)
    logits = pi1 @ params["w_pi2"] + params["b_pi2"]
    v1 = jnp.clip(x @ params["w_v1"] + params["b_v1"], 0.0, 6.0)
    values = v1 @ params["w_v2"] + params["b_v2"]
    return logits, values


if __name__ == "__main__":
    key = jax.random.PRNGKey(0)
    k_param, k_x = jax.random.split(key)

    # CartPole-like feature sizes; batch large enough to exercise the tiled path.
    B, S_DIM, A_DIM = 128, 4, 2

    params = init_params(k_param, S_DIM, A_DIM)
    packed = pack_params(params, S_DIM, A_DIM)
    x = jax.random.normal(k_x, (B, S_DIM), dtype=jnp.float32)

    logits, values = net_forward(x, packed)
    jax.block_until_ready((logits, values))

    # Check against the pure-JAX (unfused) reference.
    logits_ref, values_ref = net_forward_ref(x, params)
    assert logits.shape == (B, A_DIM)
    assert values.shape == (B, 1)
    assert jnp.allclose(logits, logits_ref, atol=1e-5, rtol=1e-5)
    assert jnp.allclose(values, values_ref, atol=1e-5, rtol=1e-5)

    # Also exercise a small, non-128 batch path (single grid step).
    x_small = x[:8]
    l_s, v_s = net_forward(x_small, packed)
    jax.block_until_ready((l_s, v_s))
    assert jnp.allclose(l_s, logits_ref[:8], atol=1e-5, rtol=1e-5)
    assert jnp.allclose(v_s, values_ref[:8], atol=1e-5, rtol=1e-5)

    print("KERNEL_OK")
</pallas_src>

<mosaic_0001>
module attributes {stable_mosaic.version = 11 : i64} {
  func.func @_net_fused_kernel(%arg0: i32, %arg1: memref<128x4xf32, #tpu.memory_space<vmem>>, %arg2: memref<4x384xf32, #tpu.memory_space<vmem>>, %arg3: memref<1x384xf32, #tpu.memory_space<vmem>>, %arg4: memref<384x128xf32, #tpu.memory_space<vmem>>, %arg5: memref<1x128xf32, #tpu.memory_space<vmem>>, %arg6: memref<128x128xf32, #tpu.memory_space<vmem>>) attributes {dimension_semantics = [#tpu.dimension_semantics<parallel>], iteration_bounds = array<i64: 1>, scalar_prefetch = 0 : i64, scratch_operands = 0 : i64, tpu.core_type = #tpu.core_type<tc>, window_params = [{transform_indices = @transform_0, window_bounds = array<i64: 128, 4>}, {pipeline_mode = #tpu.pipeline_mode<synchronous>, transform_indices = @transform_1, window_bounds = array<i64: 4, 384>}, {pipeline_mode = #tpu.pipeline_mode<synchronous>, transform_indices = @transform_2, window_bounds = array<i64: 1, 384>}, {pipeline_mode = #tpu.pipeline_mode<synchronous>, transform_indices = @transform_3, window_bounds = array<i64: 384, 128>}, {pipeline_mode = #tpu.pipeline_mode<synchronous>, transform_indices = @transform_4, window_bounds = array<i64: 1, 128>}, {transform_indices = @transform_5, window_bounds = array<i64: 128, 128>}]} {
    %c0 = arith.constant 0 : index
    %c0_0 = arith.constant 0 : index
    %0 = vector.load %arg1[%c0, %c0_0] : memref<128x4xf32, #tpu.memory_space<vmem>>, vector<128x4xf32>
    %c0_1 = arith.constant 0 : index
    %c0_2 = arith.constant 0 : index
    %1 = vector.load %arg2[%c0_1, %c0_2] : memref<4x384xf32, #tpu.memory_space<vmem>>, vector<4x384xf32>
    %cst = arith.constant dense<0.000000e+00> : vector<128x384xf32>
    %2 = tpu.matmul %0, %1, %cst {dimension_numbers = #tpu.dot_dimension_numbers<[1], [0], [0], [1], [0, 0, 1, 1], [], []>} : vector<128x4xf32>, vector<4x384xf32>, vector<128x384xf32> -> vector<128x384xf32>
    %c0_3 = arith.constant 0 : index
    %c0_4 = arith.constant 0 : index
    %3 = vector.load %arg3[%c0_3, %c0_4] : memref<1x384xf32, #tpu.memory_space<vmem>>, vector<1x384xf32>
    %4 = vector.broadcast %3 : vector<1x384xf32> to vector<128x384xf32>
    %5 = arith.addf %2, %4 : vector<128x384xf32>
    %cst_5 = arith.constant 0.000000e+00 : f32
    %cst_6 = arith.constant 6.000000e+00 : f32
    %6 = vector.broadcast %cst_5 : f32 to vector<128x384xf32>
    %7 = arith.maximumf %6, %5 : vector<128x384xf32>
    %8 = vector.broadcast %cst_6 : f32 to vector<128x384xf32>
    %9 = arith.minimumf %8, %7 : vector<128x384xf32>
    %c0_7 = arith.constant 0 : index
    %c0_8 = arith.constant 0 : index
    %10 = vector.load %arg4[%c0_7, %c0_8] : memref<384x128xf32, #tpu.memory_space<vmem>>, vector<384x128xf32>
    %cst_9 = arith.constant dense<0.000000e+00> : vector<128x128xf32>
    %11 = tpu.matmul %9, %10, %cst_9 {dimension_numbers = #tpu.dot_dimension_numbers<[1], [0], [0], [1], [0, 0, 1, 1], [], []>} : vector<128x384xf32>, vector<384x128xf32>, vector<128x128xf32> -> vector<128x128xf32>
    %c0_10 = arith.constant 0 : index
    %c0_11 = arith.constant 0 : index
    %12 = vector.load %arg5[%c0_10, %c0_11] : memref<1x128xf32, #tpu.memory_space<vmem>>, vector<1x128xf32>
    %13 = vector.broadcast %12 : vector<1x128xf32> to vector<128x128xf32>
    %14 = arith.addf %11, %13 : vector<128x128xf32>
    %c0_12 = arith.constant 0 : index
    %c0_13 = arith.constant 0 : index
    %15 = vector.load %arg6[%c0_12, %c0_13] : memref<128x128xf32, #tpu.memory_space<vmem>>, vector<128x128xf32>
    tpu.vector_store %arg6[%c0_12, %c0_13], %14 {strides = array<i32>} : memref<128x128xf32, #tpu.memory_space<vmem>>, vector<128x128xf32>,
    return
  }
  func.func @transform_0(%arg0: i32) -> (i32, i32) {
    %c0_i32 = arith.constant 0 : i32
    %c0_i32_0 = arith.constant 0 : i32
    return %arg0, %c0_i32 : i32, i32
  }
  func.func @transform_1(%arg0: i32) -> (i32, i32) {
    %c0_i32 = arith.constant 0 : i32
    %c0_i32_0 = arith.constant 0 : i32
    %c0_i32_1 = arith.constant 0 : i32
    return %c0_i32, %c0_i32_0 : i32, i32
  }
  func.func @transform_2(%arg0: i32) -> (i32, i32) {
    %c0_i32 = arith.constant 0 : i32
    %c0_i32_0 = arith.constant 0 : i32
    %c0_i32_1 = arith.constant 0 : i32
    return %c0_i32, %c0_i32_0 : i32, i32
  }
  func.func @transform_3(%arg0: i32) -> (i32, i32) {
    %c0_i32 = arith.constant 0 : i32
    %c0_i32_0 = arith.constant 0 : i32
    %c0_i32_1 = arith.constant 0 : i32
    return %c0_i32, %c0_i32_0 : i32, i32
  }
  func.func @transform_4(%arg0: i32) -> (i32, i32) {
    %c0_i32 = arith.constant 0 : i32
    %c0_i32_0 = arith.constant 0 : i32
    %c0_i32_1 = arith.constant 0 : i32
    return %c0_i32, %c0_i32_0 : i32, i32
  }
  func.func @transform_5(%arg0: i32) -> (i32, i32) {
    %c0_i32 = arith.constant 0 : i32
    %c0_i32_0 = arith.constant 0 : i32
    return %arg0, %c0_i32 : i32, i32
  }
}

</mosaic_0001>

<bundles_post_ra>
// kernel: _net_forward_padded.1
= control target key start
LH: loop header
LB: loop body
LE: loop exit
PB: predicated region body
PF: predicated region fallthrough
CT: control target
= control target key end

     0   :  { %10 = vsyncpa [#allocation3], 0  ;;  %s1170_s18 = smov [#allocation2]   ;;  %s1459_s0 = inlined_call_operand.vmem [shape: f32[128,4], index: 0, kind: input, shape index: {}]   ;;  %s1460_s1 = inlined_call_operand.vmem [shape: f32[4,384], index: 1, kind: input, shape index: {}]   ;;  %s1461_s2 = inlined_call_operand.vmem [shape: f32[1,384], index: 2, kind: input, shape index: {}]   ;;  %s1462_s3 = inlined_call_operand.hbm [shape: f32[384,128], index: 3, kind: input, shape index: {}]   ;;  %s1463_s4 = inlined_call_operand.vmem [shape: f32[1,128], index: 4, kind: input, shape index: {}]   ;;  %s1464_s5 = inlined_call_operand.vmem [shape: f32[128,128], index: 5, kind: output, shape index: {}]  }
   0x1   :  { %s22_s19 = sshll.u32 %s1170_s18, 4  ;;  %s23_s19 = int_to_ptr.vmem [resolvable:$true] %s22_s19 }
   0x2   :  { %s1156_s20 = scalar_lea.vmem %s23_s19, 6144  ;;  %p1161_p1 = scmp.lt.s32.totalorder %s23_s19, %s23_s19 }
   0x3   :  { %p1157_p0 = scmp.ne.s32.totalorder %s23_s19, %s1156_s20  ;;  %p1162_p2 = scmp.lt.s32.totalorder %s1156_s20, %s1156_s20 }
   0x5   :  { %p1163_p3 = por %p1162_p2, %p1161_p1 }
   0x7   :  { %p1164_p4 = pnand %p1163_p3, %p1157_p0 }
   0x9   :  { %1167 = shalt.err (!%p1164_p4)
}
   0xa   :  { %s1171_s21 = smov 128   ;;  %s1172_s22 = smov 8  }
   0xb   :  { %28 = dma.hbm_to_vmem [thread:$0]  %s1462_s3, 6144, %s23_s19, [#allocation3], %s1171_s21, %s1171_s21, %s1172_s22  }
   0xc   :  { %1168 = dma.done.wait [#allocation3], 6144  }
   0xd   :  { %1169 = vsyncadd [#allocation3], 4294961152  ;;  %v1173_v0 = vmov 0.0   ;;  %v50_v1 = vld [vmem:[%s1460_s1] sm:$0xff]  ;;  %vm121_vm0 = vcmask 1043456   ;;  %vm72_vm1 = vcmask 31744  }
   0xe   :  { %192 = vmatprep.mubr.f32.mxu0 %v1173_v0  ;;  %v34_v2 = vld [vmem:[%s1459_s0] sm:$0xff]  ;;  %v51_v3 = vld [vmem:[%s1460_s1 + $0x8] sm:$0xf]  ;;  %v71_v4 = vcombine.high %v50_v1, %v50_v1  ;;  %v36_v6 = vld [vmem:[%s1459_s0 + $0x10] sm:$0xff] }
   0xf   :  { %1061 = vmatprep.subr.msk.mxu1 %vm121_vm0, %v51_v3  ;;  %1063 = vmatprep.mubr.msk.f32.mxu1 %vm72_vm1, %v34_v2  ;;  %v35_v5 = vld [vmem:[%s1459_s0 + $0x8] sm:$0xff]  ;;  %v37_v7 = vld [vmem:[%s1459_s0 + $0x18] sm:$0xff]  ;;  %v560_v10 = vld [vmem:[#allocation2 + $0xf0] sm:$0xff] }
  0x10   :  { %1062 = vmatpush3.msk.msra.mxu1 %vm121_vm0, %v51_v3  ;;  %896 = vmatprep.subr.msk.mxu0 %vm121_vm0, %v71_v4  ;;  %v561_v8 = vld [vmem:[#allocation2 + $0xf8] sm:$0xff]  ;;  %v38_v11 = vld [vmem:[%s1459_s0 + $0x20] sm:$0xff]  ;;  %v544_v12 = vld [vmem:[#allocation2 + $0x70] sm:$0xff]  ;;  %v54_v4 = vlaneseq }
  0x11   :  { %1064 = vmatmul.mubr.msk.f32.vlgmr.msra.gmra.mxu1 %vm72_vm1, %v35_v5  ;;  %897 = vmatpush1.msk.msra.mxu0 %vm121_vm0, %v50_v1  ;;  %v545_v9 = vld [vmem:[#allocation2 + $0x78] sm:$0xff]  ;;  %v39_v13 = vld [vmem:[%s1459_s0 + $0x28] sm:$0xff]  ;;  %v40_v17 = vld [vmem:[%s1459_s0 + $0x30] sm:$0xff] }
  0x12   :  { %1066 = vmatprep.mubr.msk.f32.mxu1 %vm72_vm1, %v36_v6  ;;  %898 = vmatmul.mubr.msk.f32.vlgmr.msra.gmra.mxu0 %vm72_vm1, %v34_v2  ;;  %v559_v14 = vld [vmem:[#allocation2 + $0xe8] sm:$0xff]  ;;  %v577_v15 = vld [vmem:[#allocation2 + $0x178] sm:$0xff]  ;;  %v558_v19 = vld [vmem:[#allocation2 + $0xe0] sm:$0xff] }
  0x13   :  { %198 = vmatprep.mubr.f32.mxu0 %v1173_v0  ;;  %949 = vmatprep.subr.mxu1 %v561_v8  ;;  %v543_v16 = vld [vmem:[#allocation2 + $0x68] sm:$0xff]  ;;  %v1249_v18 = vld [vmem:[%s1459_s0 + $0x38] sm:$0xff]  ;;  %v542_v20 = vld [vmem:[#allocation2 + $0x60] sm:$0xff] }
  0x14   :  { %950 = vmatpush3.msra.mxu1 %v545_v9  ;;  %1087 = vmatprep.subr.mxu0 %v577_v15  ;;  %v576_v21 = vld [vmem:[#allocation2 + $0x170] sm:$0xff]  ;;  %v1258_v22 = vld [vmem:[%s1459_s0 + $0x40] sm:$0xff]  ;;  %v557_v23 = vld [vmem:[#allocation2 + $0xd8] sm:$0xff] }
  0x15   :  { %1067 = vmatmul.mubr.msk.f32.gmra.mxu1 %vm72_vm1, %v37_v7  ;;  %951 = vmatprep.subr.mxu1 %v560_v10  ;;  %v1265_v24 = vld [vmem:[%s1459_s0 + $0x48] sm:$0xff]  ;;  %v541_v25 = vld [vmem:[#allocation2 + $0x58] sm:$0xff]  ;;  %v1274_v27 = vld [vmem:[%s1459_s0 + $0x50] sm:$0xff] }
  0x16   :  { %1069 = vmatprep.mubr.msk.f32.mxu1 %vm72_vm1, %v38_v11  ;;  %899 = vmatmul.mubr.msk.f32.gmra.mxu0 %vm72_vm1, %v35_v5  ;;  %v575_v26 = vld [vmem:[#allocation2 + $0x168] sm:$0xff]  ;;  %v556_v28 = vld [vmem:[#allocation2 + $0xd0] sm:$0xff]  ;;  %v1281_v29 = vld [vmem:[%s1459_s0 + $0x58] sm:$0xff]  ;;  %v55_v5 = vshrl.u32 %v54_v4, 7 }
  0x17   :  { %204 = vmatprep.mubr.f32.mxu0 %v1173_v0  ;;  %952 = vmatpush3.msra.mxu1 %v544_v12  ;;  %v540_v30 = vld [vmem:[#allocation2 + $0x50] sm:$0xff]  ;;  %v574_v31 = vld [vmem:[#allocation2 + $0x160] sm:$0xff]  ;;  %v555_v33 = vld [vmem:[#allocation2 + $0xc8] sm:$0xff] }
  0x18   :  { %953 = vmatprep.subr.mxu1 %v559_v14  ;;  %1088 = vmatpush3.msra.mxu0 %v577_v15  ;;  %v1290_v32 = vld [vmem:[%s1459_s0 + $0x60] sm:$0xff]  ;;  %v47_v34 = vld [vmem:[%s1459_s0 + $0x68] sm:$0xff]  ;;  %v573_v36 = vld [vmem:[#allocation2 + $0x158] sm:$0xff]  ;;  %v60_v9 = vsub.s32 1, %v55_v5 }
  0x19   :  { %1070 = vmatmul.mubr.msk.f32.gmra.mxu1 %vm72_vm1, %v39_v13  ;;  %1089 = vmatprep.subr.mxu0 %v576_v21  ;;  %v539_v35 = vld [vmem:[#allocation2 + $0x48] sm:$0xff]  ;;  %v48_v37 = vld [vmem:[%s1459_s0 + $0x70] sm:$0xff]  ;;  %v554_v38 = vld [vmem:[#allocation2 + $0xc0] sm:$0xff] }
  0x1a   :  { %1072 = vmatprep.mubr.msk.f32.mxu1 %vm72_vm1, %v40_v17  ;;  %900 = vmatmul.mubr.msk.f32.gmra.mxu0 %vm72_vm1, %v36_v6  ;;  %v49_v39 = vld [vmem:[%s1459_s0 + $0x78] sm:$0xff]  ;;  %v538_v40 = vld [vmem:[#allocation2 + $0x40] sm:$0xff]  ;;  %v572_v41 = vld [vmem:[#allocation2 + $0x150] sm:$0xff]  ;;  %v64_v6 = vsub.s32 2, %v55_v5 }
  0x1b   :  { %954 = vmatpush3.msra.mxu1 %v543_v16  ;;  %210 = vmatprep.mubr.f32.mxu0 %v1173_v0  ;;  %v553_v42 = vld [vmem:[#allocation2 + $0xb8] sm:$0xff]  ;;  %v571_v44 = vld [vmem:[#allocation2 + $0x148] sm:$0xff]  ;;  %v552_v45 = vld [vmem:[#allocation2 + $0xb0] sm:$0xff] }
  0x1c   :  { %955 = vmatprep.subr.mxu1 %v558_v19  ;;  %1090 = vmatpush3.msra.mxu0 %v576_v21  ;;  %v537_v43 = vld [vmem:[#allocation2 + $0x38] sm:$0xff]  ;;  %v536_v46 = vld [vmem:[#allocation2 + $0x30] sm:$0xff]  ;;  %v570_v47 = vld [vmem:[#allocation2 + $0x140] sm:$0xff] }
  0x1d   :  { %1073 = vmatmul.mubr.msk.f32.gmra.mxu1 %vm72_vm1, %v1249_v18  ;;  %1091 = vmatprep.subr.mxu0 %v575_v26  ;;  %v551_v48 = vld [vmem:[#allocation2 + $0xa8] sm:$0xff]  ;;  %v569_v50 = vld [vmem:[#allocation2 + $0x138] sm:$0xff]  ;;  %v550_v51 = vld [vmem:[#allocation2 + $0xa0] sm:$0xff] }
  0x1e   :  { %1075 = vmatprep.mubr.msk.f32.mxu1 %vm72_vm1, %v1258_v22  ;;  %956 = vmatpush3.msra.mxu1 %v542_v20  ;;  %v535_v49 = vld [vmem:[#allocation2 + $0x28] sm:$0xff]  ;;  %v568_v52 = vld [vmem:[#allocation2 + $0x130] sm:$0xff]  ;;  %v534_v53 = vld [vmem:[#allocation2 + $0x20] sm:$0xff] }
  0x1f   :  { %901 = vmatmul.mubr.msk.f32.gmra.mxu0 %vm72_vm1, %v37_v7  ;;  %957 = vmatprep.subr.mxu1 %v557_v23  ;;  %v549_v54 = vld [vmem:[#allocation2 + $0x98] sm:$0xff]  ;;  %v567_v55 = vld [vmem:[#allocation2 + $0x128] sm:$0xff]  ;;  %v548_v57 = vld [vmem:[#allocation2 + $0x90] sm:$0xff]  ;;  %v56_v7 = vsub.s32 0, %v55_v5 }
  0x20   :  { %216 = vmatprep.mubr.f32.mxu0 %v1173_v0  ;;  %958 = vmatpush3.msra.mxu1 %v541_v25  ;;  %v533_v56 = vld [vmem:[#allocation2 + $0x18] sm:$0xff]  ;;  %v566_v58 = vld [vmem:[#allocation2 + $0x120] sm:$0xff]  ;;  %v532_v59 = vld [vmem:[#allocation2 + $0x10] sm:$0xff] }
  0x21   :  { %1076 = vmatmul.mubr.msk.f32.gmra.mxu1 %vm72_vm1, %v1265_v24  ;;  %959 = vmatprep.subr.mxu1 %v556_v28  ;;  %v547_v60 = vld [vmem:[#allocation2 + $0x88] sm:$0xff]  ;;  %v565_v61 = vld [vmem:[#allocation2 + $0x118] sm:$0xff]  ;;  %v546_v63 = vld [vmem:[#allocation2 + $0x80] sm:$0xff] }
  0x22   :  { %1078 = vmatprep.mubr.msk.f32.mxu1 %vm72_vm1, %v1274_v27  ;;  %1092 = vmatpush3.msra.mxu0 %v575_v26  ;;  %v531_v62 = vld [vmem:[#allocation2 + $0x8] sm:$0xff]  ;;  %v530_v1 = vld [vmem:[#allocation2] sm:$0xff] }
  0x23   :  { %902 = vmatmul.mubr.msk.f32.gmra.mxu0 %vm72_vm1, %v38_v11  ;;  %960 = vmatpush3.msra.mxu1 %v540_v30  ;;  %v563_v2 = vld [vmem:[#allocation2 + $0x108] sm:$0xff]  ;;  %v562_v3 = vld [vmem:[#allocation2 + $0x100] sm:$0xff] }
  0x24   :  { %222 = vmatprep.mubr.f32.mxu0 %v1173_v0  ;;  %1093 = vmatprep.subr.mxu0 %v574_v31  ;;  %v52_v8 = vld [vmem:[%s1461_s2] sm:$0x7] }
  0x25   :  { %1079 = vmatmul.mubr.msk.f32.gmra.mxu1 %vm72_vm1, %v1281_v29  ;;  %961 = vmatprep.subr.mxu1 %v555_v33  ;;  %v1336_v10 = vrot.slane %v52_v8, %v64_v6  ;;  %v1338_v11 = vrot.slane %v52_v8, %v56_v7 }
  0x26   :  { %1081 = vmatprep.mubr.msk.f32.mxu1 %vm72_vm1, %v1290_v32  ;;  %1094 = vmatpush3.msra.mxu0 %v574_v31 }
  0x27   :  { %903 = vmatmul.mubr.msk.f32.gmra.mxu0 %vm72_vm1, %v39_v13  ;;  %962 = vmatpush3.msra.mxu1 %v539_v35  ;;  %v1340_v13 = vrot.slane %v52_v8, %v60_v9 }
  0x28   :  { %228 = vmatprep.mubr.f32.mxu0 %v1173_v0  ;;  %1095 = vmatprep.subr.mxu0 %v573_v36 }
  0x29   :  { %1082 = vmatmul.mubr.msk.f32.gmra.mxu1 %vm72_vm1, %v47_v34  ;;  %963 = vmatprep.subr.mxu1 %v554_v38 }
  0x2a   :  { %1084 = vmatprep.mubr.msk.f32.mxu1 %vm72_vm1, %v48_v37  ;;  %1096 = vmatpush3.msra.mxu0 %v573_v36 }
  0x2b   :  { %904 = vmatmul.mubr.msk.f32.gmra.mxu0 %vm72_vm1, %v40_v17  ;;  %964 = vmatpush3.msra.mxu1 %v538_v40 }
  0x2c   :  { %234 = vmatprep.mubr.f32.mxu0 %v1173_v0  ;;  %1097 = vmatprep.subr.mxu0 %v572_v41 }
  0x2d   :  { %1085 = vmatmul.mubr.msk.f32.gmra.mxu1 %vm72_vm1, %v49_v39  ;;  %965 = vmatprep.subr.mxu1 %v553_v42 }
  0x2e   :  { %1098 = vmatpush3.msra.mxu0 %v572_v41  ;;  %966 = vmatpush3.msra.mxu1 %v537_v43 }
  0x2f   :  { %905 = vmatmul.mubr.msk.f32.gmra.mxu0 %vm72_vm1, %v1249_v18  ;;  %1099 = vmatprep.subr.mxu0 %v571_v44 }
  0x30   :  { %240 = vmatprep.mubr.f32.mxu0 %v1173_v0  ;;  %967 = vmatprep.subr.mxu1 %v552_v45 }
  0x31   :  { %1100 = vmatpush3.msra.mxu0 %v571_v44  ;;  %968 = vmatpush3.msra.mxu1 %v536_v46 }
  0x32   :  { %1101 = vmatprep.subr.mxu0 %v570_v47  ;;  %969 = vmatprep.subr.mxu1 %v551_v48 }
  0x33   :  { %906 = vmatmul.mubr.msk.f32.gmra.mxu0 %vm72_vm1, %v1258_v22  ;;  %970 = vmatpush3.msra.mxu1 %v535_v49 }
  0x34   :  { %246 = vmatprep.mubr.f32.mxu0 %v1173_v0  ;;  %1102 = vmatpush3.msra.mxu0 %v570_v47 }
  0x35   :  { %1103 = vmatprep.subr.mxu0 %v569_v50  ;;  %971 = vmatprep.subr.mxu1 %v550_v51 }
  0x36   :  { %1104 = vmatpush3.msra.mxu0 %v569_v50  ;;  %972 = vmatpush3.msra.mxu1 %v534_v53 }
  0x37   :  { %907 = vmatmul.mubr.msk.f32.gmra.mxu0 %vm72_vm1, %v1265_v24  ;;  %1105 = vmatprep.subr.mxu0 %v568_v52 }
  0x38   :  { %252 = vmatprep.mubr.f32.mxu0 %v1173_v0  ;;  %1106 = vmatpush3.msra.mxu0 %v568_v52 }
  0x39   :  { %973 = vmatprep.subr.mxu1 %v549_v54  ;;  %1107 = vmatprep.subr.mxu0 %v567_v55 }
  0x3a   :  { %974 = vmatpush3.msra.mxu1 %v533_v56  ;;  %1108 = vmatpush3.msra.mxu0 %v567_v55 }
  0x3b   :  { %908 = vmatmul.mubr.msk.f32.gmra.mxu0 %vm72_vm1, %v1274_v27  ;;  %975 = vmatprep.subr.mxu1 %v548_v57 }
  0x3c   :  { %258 = vmatprep.mubr.f32.mxu0 %v1173_v0  ;;  %1109 = vmatprep.subr.mxu0 %v566_v58 }
  0x3d   :  { %976 = vmatpush3.msra.mxu1 %v532_v59  ;;  %1110 = vmatpush3.msra.mxu0 %v566_v58 }
  0x3e   :  { %977 = vmatprep.subr.mxu1 %v547_v60  ;;  %1111 = vmatprep.subr.mxu0 %v565_v61 }
  0x3f   :  { %909 = vmatmul.mubr.msk.f32.gmra.mxu0 %vm72_vm1, %v1281_v29  ;;  %978 = vmatpush3.msra.mxu1 %v531_v62 }
  0x40   :  { %264 = vmatprep.mubr.f32.mxu0 %v1173_v0  ;;  %1112 = vmatpush3.msra.mxu0 %v565_v61 }
  0x41   :  { %979 = vmatprep.subr.mxu1 %v546_v63 }
  0x42   :  { %980 = vmatpush3.msra.mxu1 %v530_v1 }
  0x43   :  { %910 = vmatmul.mubr.msk.f32.gmra.mxu0 %vm72_vm1, %v1290_v32 }
  0x44   :  { %270 = vmatprep.mubr.f32.mxu0 %v1173_v0 }
  0x47   :  { %911 = vmatmul.mubr.msk.f32.gmra.mxu0 %vm72_vm1, %v47_v34 }
  0x48   :  { %276 = vmatprep.mubr.f32.mxu0 %v1173_v0 }
  0x4b   :  { %912 = vmatmul.mubr.msk.f32.gmra.mxu0 %vm72_vm1, %v48_v37 }
  0x4c   :  { %282 = vmatprep.mubr.f32.mxu0 %v1173_v0  ;;  %v564_v0 = vld [vmem:[#allocation2 + $0x110] sm:$0xff] }
  0x4d   :  { %1113 = vmatprep.subr.mxu0 %v564_v0 }
  0x4e   :  { %1114 = vmatpush3.msra.mxu0 %v564_v0 }
  0x4f   :  { %913 = vmatmul.mubr.msk.f32.gmra.mxu0 %vm72_vm1, %v49_v39  ;;  %1115 = vmatprep.subr.mxu0 %v563_v2 }
  0x50   :  { %1116 = vmatpush3.msra.mxu0 %v563_v2 }
  0x51   :  { %1117 = vmatprep.subr.mxu0 %v562_v3 }
  0x52   :  { %1118 = vmatpush3.msra.mxu0 %v562_v3 }
  0xd1   :  { %v1065_v12 = vpop.f32.mrf.mxu1 }
  0xd2   :  { %v361_v14 = vadd.f32 %v1065_v12, %v1336_v10  ;;  %v194_v15 = vpop.f32.mrf.mxu0 }
  0xd3   :  { %v355_v16 = vpop.f32.mrf.mxu1  ;;  %v195_v17 = vadd.f32 %v194_v15, %v1338_v11 }
  0xd4   :  { %v439_v18 = vmax.f32 %v361_v14, 0.0  ;;  %v356_v19 = vadd.f32 %v355_v16, %v1336_v10  ;;  %v196_v20 = vpop.f32.mrf.mxu0 }
  0xd5   :  { %v1068_v21 = vpop.f32.mrf.mxu1  ;;  %v197_v22 = vadd.f32 %v196_v20, %v1340_v13  ;;  %v434_v24 = vmax.f32 %v195_v17, 0.0 }
  0xd6   :  { %v436_v23 = vmax.f32 %v356_v19, 0.0  ;;  %v200_v25 = vpop.f32.mrf.mxu0  ;;  %v487_v26 = vmin.f32 %v439_v18, 6.0  ;;  %v371_v27 = vadd.f32 %v1068_v21, %v1336_v10 }
  0xd7   :  { %v365_v28 = vpop.f32.mrf.mxu1  ;;  %v435_v29 = vmax.f32 %v197_v22, 0.0  ;;  %v201_v30 = vadd.f32 %v200_v25, %v1338_v11  ;;  %v482_v39 = vmin.f32 %v434_v24, 6.0 }
  0xd8   :  { %v484_v31 = vmin.f32 %v436_v23, 6.0  ;;  %v202_v32 = vpop.f32.mrf.mxu0  ;;  %v445_v33 = vmax.f32 %v371_v27, 0.0  ;;  %v366_v34 = vadd.f32 %v365_v28, %v1336_v10 }
  0xd9   :  { %v1071_v35 = vpop.f32.mrf.mxu1  ;;  %v483_v36 = vmin.f32 %v435_v29, 6.0  ;;  %v203_v37 = vadd.f32 %v202_v32, %v1340_v13  ;;  %v437_v40 = vmax.f32 %v201_v30, 0.0 }
  0xda   :  { %1119 = vmatprep.mubr.f32.mxu0 %v484_v31  ;;  %v381_v38 = vadd.f32 %v1071_v35, %v1336_v10  ;;  %v206_v41 = vpop.f32.mrf.mxu0  ;;  %v442_v42 = vmax.f32 %v366_v34, 0.0  ;;  %v493_v46 = vmin.f32 %v445_v33, 6.0 }
  0xdb   :  { %1120 = vmatmul.mubr.f32.vlgmr.msra.gmra.mxu0 %v487_v26  ;;  %v375_v43 = vpop.f32.mrf.mxu1  ;;  %v438_v44 = vmax.f32 %v203_v37, 0.0  ;;  %v207_v45 = vadd.f32 %v206_v41, %v1338_v11  ;;  %649 = vmatprep.mubr.f32.mxu1 %v483_v36  ;;  %v485_v54 = vmin.f32 %v437_v40, 6.0 }
  0xdc   :  { %v451_v47 = vmax.f32 %v381_v38, 0.0  ;;  %v208_v48 = vpop.f32.mrf.mxu0  ;;  %650 = vmatmul.mubr.f32.vlgmr.msra.gmra.mxu1 %v482_v39  ;;  %v490_v49 = vmin.f32 %v442_v42, 6.0  ;;  %v376_v50 = vadd.f32 %v375_v43, %v1336_v10 }
  0xdd   :  { %v1074_v51 = vpop.f32.mrf.mxu1  ;;  %v486_v52 = vmin.f32 %v438_v44, 6.0  ;;  %v209_v53 = vadd.f32 %v208_v48, %v1340_v13  ;;  %v440_v55 = vmax.f32 %v207_v45, 0.0 }
  0xde   :  { %1122 = vmatprep.mubr.f32.mxu0 %v490_v49  ;;  %v448_v57 = vmax.f32 %v376_v50, 0.0  ;;  %v391_v58 = vadd.f32 %v1074_v51, %v1336_v10  ;;  %v499_v62 = vmin.f32 %v451_v47, 6.0 }
  0xdf   :  { %v212_v56 = vpop.f32.mrf.mxu0  ;;  %v385_v59 = vpop.f32.mrf.mxu1  ;;  %v441_v60 = vmax.f32 %v209_v53, 0.0  ;;  %654 = vmatprep.mubr.f32.mxu1 %v486_v52  ;;  %1123 = vmatmul.mubr.f32.gmra.mxu0 %v493_v46  ;;  %v488_v7 = vmin.f32 %v440_v55, 6.0 }
  0xe0   :  { %v213_v61 = vadd.f32 %v212_v56, %v1338_v11  ;;  %v386_v63 = vadd.f32 %v385_v59, %v1336_v10  ;;  %655 = vmatmul.mubr.f32.gmra.mxu1 %v485_v54  ;;  %v496_v1 = vmin.f32 %v448_v57, 6.0  ;;  %v457_v2 = vmax.f32 %v391_v58, 0.0 }
  0xe1   :  { %v214_v0 = vpop.f32.mrf.mxu0  ;;  %v1077_v3 = vpop.f32.mrf.mxu1  ;;  %v489_v4 = vmin.f32 %v441_v60, 6.0 }
  0xe2   :  { %v215_v5 = vadd.f32 %v214_v0, %v1340_v13  ;;  %v454_v6 = vmax.f32 %v386_v63, 0.0  ;;  %v443_v8 = vmax.f32 %v213_v61, 0.0  ;;  %1125 = vmatprep.mubr.f32.mxu0 %v496_v1  ;;  %v401_v12 = vadd.f32 %v1077_v3, %v1336_v10 }
  0xe3   :  { %v218_v9 = vpop.f32.mrf.mxu0  ;;  %v395_v14 = vpop.f32.mrf.mxu1  ;;  %659 = vmatprep.mubr.f32.mxu1 %v489_v4  ;;  %v505_v17 = vmin.f32 %v457_v2, 6.0  ;;  %1126 = vmatmul.mubr.f32.gmra.mxu0 %v499_v62 }
  0xe4   :  { %v444_v15 = vmax.f32 %v215_v5, 0.0  ;;  %v219_v16 = vadd.f32 %v218_v9, %v1338_v11  ;;  %v502_v18 = vmin.f32 %v454_v6, 6.0  ;;  %660 = vmatmul.mubr.f32.gmra.mxu1 %v488_v7  ;;  %v463_v20 = vmax.f32 %v401_v12, 0.0 }
  0xe5   :  { %v220_v19 = vpop.f32.mrf.mxu0  ;;  %v396_v21 = vadd.f32 %v395_v14, %v1336_v10  ;;  %v1080_v22 = vpop.f32.mrf.mxu1  ;;  %v491_v26 = vmin.f32 %v443_v8, 6.0 }
  0xe6   :  { %v492_v23 = vmin.f32 %v444_v15, 6.0  ;;  %v221_v24 = vadd.f32 %v220_v19, %v1340_v13  ;;  %1128 = vmatprep.mubr.f32.mxu0 %v502_v18  ;;  %v411_v25 = vadd.f32 %v1080_v22, %v1336_v10  ;;  %v446_v27 = vmax.f32 %v219_v16, 0.0 }
  0xe7   :  { %v224_v28 = vpop.f32.mrf.mxu0  ;;  %v460_v29 = vmax.f32 %v396_v21, 0.0  ;;  %v405_v30 = vpop.f32.mrf.mxu1  ;;  %v511_v33 = vmin.f32 %v463_v20, 6.0  ;;  %1129 = vmatmul.mubr.f32.gmra.mxu0 %v505_v17 }
  0xe8   :  { %v447_v31 = vmax.f32 %v221_v24, 0.0  ;;  %v225_v32 = vadd.f32 %v224_v28, %v1338_v11  ;;  %664 = vmatprep.mubr.f32.mxu1 %v492_v23  ;;  %v469_v34 = vmax.f32 %v411_v25, 0.0  ;;  %v406_v37 = vadd.f32 %v405_v30, %v1336_v10 }
  0xe9   :  { %v226_v35 = vpop.f32.mrf.mxu0  ;;  %665 = vmatmul.mubr.f32.gmra.mxu1 %v491_v26  ;;  %v508_v36 = vmin.f32 %v460_v29, 6.0  ;;  %v1083_v38 = vpop.f32.mrf.mxu1  ;;  %v494_v41 = vmin.f32 %v446_v27, 6.0 }
  0xea   :  { %v495_v39 = vmin.f32 %v447_v31, 6.0  ;;  %v227_v40 = vadd.f32 %v226_v35, %v1340_v13  ;;  %v449_v42 = vmax.f32 %v225_v32, 0.0  ;;  %v466_v44 = vmax.f32 %v406_v37, 0.0 }
  0xeb   :  { %v230_v43 = vpop.f32.mrf.mxu0  ;;  %1131 = vmatprep.mubr.f32.mxu0 %v508_v36  ;;  %v421_v45 = vadd.f32 %v1083_v38, %v1336_v10  ;;  %v415_v46 = vpop.f32.mrf.mxu1  ;;  %v517_v49 = vmin.f32 %v469_v34, 6.0 }
  0xec   :  { %v450_v47 = vmax.f32 %v227_v40, 0.0  ;;  %v231_v48 = vadd.f32 %v230_v43, %v1338_v11  ;;  %669 = vmatprep.mubr.f32.mxu1 %v495_v39  ;;  %1132 = vmatmul.mubr.f32.gmra.mxu0 %v511_v33  ;;  %v416_v50 = vadd.f32 %v415_v46, %v1336_v10  ;;  %v514_v52 = vmin.f32 %v466_v44, 6.0 }
  0xed   :  { %v232_v51 = vpop.f32.mrf.mxu0  ;;  %670 = vmatmul.mubr.f32.gmra.mxu1 %v494_v41  ;;  %v475_v53 = vmax.f32 %v421_v45, 0.0  ;;  %v1086_v54 = vpop.f32.mrf.mxu1  ;;  %v497_v58 = vmin.f32 %v449_v42, 6.0 }
  0xee   :  { %v498_v55 = vmin.f32 %v450_v47, 6.0  ;;  %v233_v56 = vadd.f32 %v232_v51, %v1340_v13  ;;  %v472_v57 = vmax.f32 %v416_v50, 0.0  ;;  %v452_v59 = vmax.f32 %v231_v48, 0.0  ;;  %1134 = vmatprep.mubr.f32.mxu0 %v514_v52 }
  0xef   :  { %v236_v60 = vpop.f32.mrf.mxu0  ;;  %v431_v61 = vadd.f32 %v1086_v54, %v1336_v10  ;;  %v425_v62 = vpop.f32.mrf.mxu1  ;;  %v523_v1 = vmin.f32 %v475_v53, 6.0 }
  0xf0   :  { %v453_v63 = vmax.f32 %v233_v56, 0.0  ;;  %v237_v0 = vadd.f32 %v236_v60, %v1338_v11  ;;  %674 = vmatprep.mubr.f32.mxu1 %v498_v55  ;;  %v520_v2 = vmin.f32 %v472_v57, 6.0  ;;  %1135 = vmatmul.mubr.f32.gmra.mxu0 %v517_v49  ;;  %v426_v5 = vadd.f32 %v425_v62, %v1336_v10 }
  0xf1   :  { %v238_v3 = vpop.f32.mrf.mxu0  ;;  %675 = vmatmul.mubr.f32.gmra.mxu1 %v497_v58  ;;  %v481_v4 = vmax.f32 %v431_v61, 0.0  ;;  %v500_v8 = vmin.f32 %v452_v59, 6.0 }
  0xf2   :  { %v501_v6 = vmin.f32 %v453_v63, 6.0  ;;  %v239_v7 = vadd.f32 %v238_v3, %v1340_v13  ;;  %1137 = vmatprep.mubr.f32.mxu0 %v520_v2  ;;  %v455_v9 = vmax.f32 %v237_v0, 0.0  ;;  %v478_v14 = vmax.f32 %v426_v5, 0.0 }
  0xf3   :  { %v242_v12 = vpop.f32.mrf.mxu0  ;;  %v529_v17 = vmin.f32 %v481_v4, 6.0 }
  0xf4   :  { %v456_v15 = vmax.f32 %v239_v7, 0.0  ;;  %v243_v16 = vadd.f32 %v242_v12, %v1338_v11  ;;  %679 = vmatprep.mubr.f32.mxu1 %v501_v6  ;;  %1138 = vmatmul.mubr.f32.gmra.mxu0 %v523_v1  ;;  %v526_v19 = vmin.f32 %v478_v14, 6.0  ;;  %v503_v21 = vmin.f32 %v455_v9, 6.0 }
  0xf5   :  { %v244_v18 = vpop.f32.mrf.mxu0  ;;  %680 = vmatmul.mubr.f32.gmra.mxu1 %v500_v8 }
  0xf6   :  { %v504_v20 = vmin.f32 %v456_v15, 6.0  ;;  %v245_v10 = vadd.f32 %v244_v18, %v1340_v13  ;;  %v458_v22 = vmax.f32 %v243_v16, 0.0  ;;  %1140 = vmatprep.mubr.f32.mxu0 %v526_v19 }
  0xf7   :  { %v248_v23 = vpop.f32.mrf.mxu0 }
  0xf8   :  { %v459_v24 = vmax.f32 %v245_v10, 0.0  ;;  %v249_v25 = vadd.f32 %v248_v23, %v1338_v11  ;;  %684 = vmatprep.mubr.f32.mxu1 %v504_v20  ;;  %1141 = vmatmul.mubr.f32.gmra.mxu0 %v529_v17  ;;  %v506_v29 = vmin.f32 %v458_v22, 6.0 }
  0xf9   :  { %v250_v26 = vpop.f32.mrf.mxu0  ;;  %685 = vmatmul.mubr.f32.gmra.mxu1 %v503_v21 }
  0xfa   :  { %v507_v27 = vmin.f32 %v459_v24, 6.0  ;;  %v251_v28 = vadd.f32 %v250_v26, %v1340_v13  ;;  %v461_v30 = vmax.f32 %v249_v25, 0.0 }
  0xfb   :  { %v254_v31 = vpop.f32.mrf.mxu0 }
  0xfc   :  { %v462_v32 = vmax.f32 %v251_v28, 0.0  ;;  %v255_v33 = vadd.f32 %v254_v31, %v1338_v11  ;;  %689 = vmatprep.mubr.f32.mxu1 %v507_v27  ;;  %v509_v37 = vmin.f32 %v461_v30, 6.0 }
  0xfd   :  { %v256_v34 = vpop.f32.mrf.mxu0  ;;  %690 = vmatmul.mubr.f32.gmra.mxu1 %v506_v29 }
  0xfe   :  { %v510_v35 = vmin.f32 %v462_v32, 6.0  ;;  %v257_v36 = vadd.f32 %v256_v34, %v1340_v13  ;;  %v464_v38 = vmax.f32 %v255_v33, 0.0 }
  0xff   :  { %v260_v39 = vpop.f32.mrf.mxu0 }
 0x100   :  { %v465_v40 = vmax.f32 %v257_v36, 0.0  ;;  %v261_v41 = vadd.f32 %v260_v39, %v1338_v11  ;;  %694 = vmatprep.mubr.f32.mxu1 %v510_v35  ;;  %v512_v45 = vmin.f32 %v464_v38, 6.0 }
 0x101   :  { %v262_v42 = vpop.f32.mrf.mxu0  ;;  %695 = vmatmul.mubr.f32.gmra.mxu1 %v509_v37 }
 0x102   :  { %v513_v43 = vmin.f32 %v465_v40, 6.0  ;;  %v263_v44 = vadd.f32 %v262_v42, %v1340_v13  ;;  %v467_v46 = vmax.f32 %v261_v41, 0.0 }
 0x103   :  { %v266_v47 = vpop.f32.mrf.mxu0 }
 0x104   :  { %v468_v48 = vmax.f32 %v263_v44, 0.0  ;;  %v267_v49 = vadd.f32 %v266_v47, %v1338_v11  ;;  %699 = vmatprep.mubr.f32.mxu1 %v513_v43  ;;  %v515_v53 = vmin.f32 %v467_v46, 6.0 }
 0x105   :  { %v268_v50 = vpop.f32.mrf.mxu0  ;;  %700 = vmatmul.mubr.f32.gmra.mxu1 %v512_v45 }
 0x106   :  { %v516_v51 = vmin.f32 %v468_v48, 6.0  ;;  %v269_v52 = vadd.f32 %v268_v50, %v1340_v13  ;;  %v470_v54 = vmax.f32 %v267_v49, 0.0 }
 0x107   :  { %v272_v55 = vpop.f32.mrf.mxu0 }
 0x108   :  { %v471_v56 = vmax.f32 %v269_v52, 0.0  ;;  %v273_v57 = vadd.f32 %v272_v55, %v1338_v11  ;;  %704 = vmatprep.mubr.f32.mxu1 %v516_v51  ;;  %v518_v61 = vmin.f32 %v470_v54, 6.0 }
 0x109   :  { %v274_v58 = vpop.f32.mrf.mxu0  ;;  %705 = vmatmul.mubr.f32.gmra.mxu1 %v515_v53 }
 0x10a   :  { %v519_v59 = vmin.f32 %v471_v56, 6.0  ;;  %v275_v60 = vadd.f32 %v274_v58, %v1340_v13  ;;  %v473_v62 = vmax.f32 %v273_v57, 0.0 }
 0x10b   :  { %v278_v63 = vpop.f32.mrf.mxu0 }
 0x10c   :  { %v474_v0 = vmax.f32 %v275_v60, 0.0  ;;  %v279_v1 = vadd.f32 %v278_v63, %v1338_v11  ;;  %709 = vmatprep.mubr.f32.mxu1 %v519_v59  ;;  %v521_v5 = vmin.f32 %v473_v62, 6.0 }
 0x10d   :  { %v280_v2 = vpop.f32.mrf.mxu0  ;;  %710 = vmatmul.mubr.f32.gmra.mxu1 %v518_v61 }
 0x10e   :  { %v522_v3 = vmin.f32 %v474_v0, 6.0  ;;  %v281_v4 = vadd.f32 %v280_v2, %v1340_v13  ;;  %v476_v6 = vmax.f32 %v279_v1, 0.0 }
 0x10f   :  { %v284_v7 = vpop.f32.mrf.mxu0 }
 0x110   :  { %v477_v8 = vmax.f32 %v281_v4, 0.0  ;;  %v285_v9 = vadd.f32 %v284_v7, %v1338_v11  ;;  %714 = vmatprep.mubr.f32.mxu1 %v522_v3  ;;  %v524_v16 = vmin.f32 %v476_v6, 6.0  ;;  %v1393_v11 = vld [vmem:[%s1463_s4] ss:$0 sm:$0xff] }
 0x111   :  { %v286_v12 = vpop.f32.mrf.mxu0  ;;  %715 = vmatmul.mubr.f32.gmra.mxu1 %v521_v5 }
 0x112   :  { %v525_v14 = vmin.f32 %v477_v8, 6.0  ;;  %v287_v15 = vadd.f32 %v286_v12, %v1340_v13  ;;  %v479_v17 = vmax.f32 %v285_v9, 0.0 }
 0x114   :  { %v480_v18 = vmax.f32 %v287_v15, 0.0  ;;  %719 = vmatprep.mubr.f32.mxu1 %v525_v14  ;;  %v527_v20 = vmin.f32 %v479_v17, 6.0 }
 0x115   :  { %720 = vmatmul.mubr.f32.gmra.mxu1 %v524_v16 }
 0x116   :  { %v528_v19 = vmin.f32 %v480_v18, 6.0 }
 0x118   :  { %724 = vmatprep.mubr.f32.mxu1 %v528_v19 }
 0x119   :  { %725 = vmatmul.mubr.f32.gmra.mxu1 %v527_v20 }
 0x19b   :  { %v1121_v21 = vpop.f32.mrf.mxu0 }
 0x19c   :  { %v981_v10 = vpop.f32.mrf.mxu1 }
 0x19d   :  { %v796_v13 = vpop.f32.mrf.mxu0 }
 0x19e   :  { %v982_v22 = vpop.f32.mrf.mxu1 }
 0x19f   :  { %v983_v23 = vadd.f32 %v982_v22, %v981_v10  ;;  %v1124_v30 = vpop.f32.mrf.mxu0 }
 0x1a0   :  { %v984_v24 = vpop.f32.mrf.mxu1 }
 0x1a1   :  { %v652_v25 = vadd.f32 %v983_v23, %v1393_v11  ;;  %v806_v36 = vpop.f32.mrf.mxu0 }
 0x1a2   :  { %v985_v26 = vpop.f32.mrf.mxu1 }
 0x1a3   :  { %v986_v27 = vadd.f32 %v985_v26, %v984_v24  ;;  %v797_v28 = vadd.f32 %v796_v13, %v652_v25  ;;  %v1127_v42 = vpop.f32.mrf.mxu0 }
 0x1a4   :  { %v987_v29 = vpop.f32.mrf.mxu1 }
 0x1a5   :  { %v657_v31 = vadd.f32 %v986_v27, %v1393_v11  ;;  %875 = vst [vmem:[%s1464_s5] sm:$0xff] %v797_v28  ;;  %v816_v48 = vpop.f32.mrf.mxu0 }
 0x1a6   :  { %v988_v32 = vpop.f32.mrf.mxu1 }
 0x1a7   :  { %v802_v33 = vadd.f32 %v1121_v21, %v657_v31  ;;  %v989_v34 = vadd.f32 %v988_v32, %v987_v29  ;;  %v1130_v54 = vpop.f32.mrf.mxu0 }
 0x1a9   :  { %v990_v35 = vpop.f32.mrf.mxu1  ;;  %876 = vst [vmem:[%s1464_s5 + $0x8] sm:$0xff] %v802_v33  ;;  %v662_v37 = vadd.f32 %v989_v34, %v1393_v11  ;;  %v826_v60 = vpop.f32.mrf.mxu0 }
 0x1ab   :  { %v991_v38 = vpop.f32.mrf.mxu1  ;;  %v807_v40 = vadd.f32 %v806_v36, %v662_v37 }
 0x1ac   :  { %v992_v39 = vadd.f32 %v991_v38, %v990_v35  ;;  %v1133_v2 = vpop.f32.mrf.mxu0 }
 0x1ad   :  { %v993_v41 = vpop.f32.mrf.mxu1  ;;  %877 = vst [vmem:[%s1464_s5 + $0x10] sm:$0xff] %v807_v40 }
 0x1ae   :  { %v667_v43 = vadd.f32 %v992_v39, %v1393_v11  ;;  %v836_v8 = vpop.f32.mrf.mxu0 }
 0x1af   :  { %v994_v44 = vpop.f32.mrf.mxu1 }
 0x1b0   :  { %v812_v45 = vadd.f32 %v1124_v30, %v667_v43  ;;  %v995_v46 = vadd.f32 %v994_v44, %v993_v41  ;;  %v1136_v17 = vpop.f32.mrf.mxu0 }
 0x1b1   :  { %v996_v47 = vpop.f32.mrf.mxu1 }
 0x1b2   :  { %878 = vst [vmem:[%s1464_s5 + $0x18] sm:$0xff] %v812_v45  ;;  %v672_v49 = vadd.f32 %v995_v46, %v1393_v11  ;;  %v846_v22 = vpop.f32.mrf.mxu0 }
 0x1b3   :  { %v997_v50 = vpop.f32.mrf.mxu1 }
 0x1b4   :  { %v998_v51 = vadd.f32 %v997_v50, %v996_v47  ;;  %v817_v52 = vadd.f32 %v816_v48, %v672_v49  ;;  %v1139_v27 = vpop.f32.mrf.mxu0 }
 0x1b5   :  { %v999_v53 = vpop.f32.mrf.mxu1 }
 0x1b6   :  { %v677_v55 = vadd.f32 %v998_v51, %v1393_v11  ;;  %879 = vst [vmem:[%s1464_s5 + $0x20] sm:$0xff] %v817_v52  ;;  %v856_v33 = vpop.f32.mrf.mxu0 }
 0x1b7   :  { %v1000_v56 = vpop.f32.mrf.mxu1 }
 0x1b8   :  { %v822_v57 = vadd.f32 %v1127_v42, %v677_v55  ;;  %v1001_v58 = vadd.f32 %v1000_v56, %v999_v53  ;;  %v1142_v39 = vpop.f32.mrf.mxu0 }
 0x1b9   :  { %v1002_v59 = vpop.f32.mrf.mxu1 }
 0x1ba   :  { %880 = vst [vmem:[%s1464_s5 + $0x28] sm:$0xff] %v822_v57  ;;  %v682_v61 = vadd.f32 %v1001_v58, %v1393_v11  ;;  %v866_v45 = vpop.f32.mrf.mxu0 }
 0x1bb   :  { %v1003_v62 = vpop.f32.mrf.mxu1 }
 0x1bc   :  { %v1004_v63 = vadd.f32 %v1003_v62, %v1002_v59  ;;  %v827_v0 = vadd.f32 %v826_v60, %v682_v61 }
 0x1bd   :  { %v1005_v1 = vpop.f32.mrf.mxu1 }
 0x1be   :  { %v687_v3 = vadd.f32 %v1004_v63, %v1393_v11  ;;  %881 = vst [vmem:[%s1464_s5 + $0x30] sm:$0xff] %v827_v0 }
 0x1bf   :  { %v1006_v4 = vpop.f32.mrf.mxu1 }
 0x1c0   :  { %v832_v5 = vadd.f32 %v1130_v54, %v687_v3  ;;  %v1007_v6 = vadd.f32 %v1006_v4, %v1005_v1 }
 0x1c1   :  { %v1008_v7 = vpop.f32.mrf.mxu1 }
 0x1c2   :  { %882 = vst [vmem:[%s1464_s5 + $0x38] sm:$0xff] %v832_v5  ;;  %v692_v9 = vadd.f32 %v1007_v6, %v1393_v11 }
 0x1c3   :  { %v1009_v12 = vpop.f32.mrf.mxu1 }
 0x1c4   :  { %v1010_v14 = vadd.f32 %v1009_v12, %v1008_v7  ;;  %v837_v15 = vadd.f32 %v836_v8, %v692_v9 }
 0x1c5   :  { %v1011_v16 = vpop.f32.mrf.mxu1 }
 0x1c6   :  { %v697_v18 = vadd.f32 %v1010_v14, %v1393_v11  ;;  %883 = vst [vmem:[%s1464_s5 + $0x40] sm:$0xff] %v837_v15 }
 0x1c7   :  { %v1012_v19 = vpop.f32.mrf.mxu1 }
 0x1c8   :  { %v842_v20 = vadd.f32 %v1133_v2, %v697_v18  ;;  %v1013_v10 = vadd.f32 %v1012_v19, %v1011_v16 }
 0x1c9   :  { %v1014_v21 = vpop.f32.mrf.mxu1 }
 0x1ca   :  { %884 = vst [vmem:[%s1464_s5 + $0x48] sm:$0xff] %v842_v20  ;;  %v702_v23 = vadd.f32 %v1013_v10, %v1393_v11 }
 0x1cb   :  { %v1015_v24 = vpop.f32.mrf.mxu1 }
 0x1cc   :  { %v1016_v13 = vadd.f32 %v1015_v24, %v1014_v21  ;;  %v847_v25 = vadd.f32 %v846_v22, %v702_v23 }
 0x1cd   :  { %v1017_v26 = vpop.f32.mrf.mxu1 }
 0x1ce   :  { %v707_v28 = vadd.f32 %v1016_v13, %v1393_v11  ;;  %885 = vst [vmem:[%s1464_s5 + $0x50] sm:$0xff] %v847_v25 }
 0x1cf   :  { %v1018_v29 = vpop.f32.mrf.mxu1 }
 0x1d0   :  { %v852_v30 = vadd.f32 %v1136_v17, %v707_v28  ;;  %v1019_v31 = vadd.f32 %v1018_v29, %v1017_v26 }
 0x1d1   :  { %v1020_v32 = vpop.f32.mrf.mxu1 }
 0x1d2   :  { %886 = vst [vmem:[%s1464_s5 + $0x58] sm:$0xff] %v852_v30  ;;  %v712_v34 = vadd.f32 %v1019_v31, %v1393_v11 }
 0x1d3   :  { %v1021_v35 = vpop.f32.mrf.mxu1 }
 0x1d4   :  { %v1022_v36 = vadd.f32 %v1021_v35, %v1020_v32  ;;  %v857_v37 = vadd.f32 %v856_v33, %v712_v34 }
 0x1d5   :  { %v1023_v38 = vpop.f32.mrf.mxu1 }
 0x1d6   :  { %v717_v40 = vadd.f32 %v1022_v36, %v1393_v11  ;;  %887 = vst [vmem:[%s1464_s5 + $0x60] sm:$0xff] %v857_v37 }
 0x1d7   :  { %v1024_v41 = vpop.f32.mrf.mxu1 }
 0x1d8   :  { %v862_v42 = vadd.f32 %v1139_v27, %v717_v40  ;;  %v1025_v43 = vadd.f32 %v1024_v41, %v1023_v38 }
 0x1d9   :  { %v1026_v44 = vpop.f32.mrf.mxu1 }
 0x1da   :  { %888 = vst [vmem:[%s1464_s5 + $0x68] sm:$0xff] %v862_v42  ;;  %v722_v46 = vadd.f32 %v1025_v43, %v1393_v11 }
 0x1db   :  { %v1027_v47 = vpop.f32.mrf.mxu1 }
 0x1dc   :  { %v867_v48 = vadd.f32 %v866_v45, %v722_v46  ;;  %v1028_v49 = vadd.f32 %v1027_v47, %v1026_v44 }
 0x1de   :  { %889 = vst [vmem:[%s1464_s5 + $0x70] sm:$0xff] %v867_v48  ;;  %v727_v50 = vadd.f32 %v1028_v49, %v1393_v11 }
 0x1e0   :  { %v872_v51 = vadd.f32 %v1142_v39, %v727_v50 }
 0x1e2   :  { %890 = vst [vmem:[%s1464_s5 + $0x78] sm:$0xff] %v872_v51 }
 0x1e3   :  { %895 = vsyncpa [#allocation3], 1 }

</bundles_post_ra>
